<compile_context>
chip_gen: v7x
topology: tpu7x:2x2x1
jax: 0.10.0
libtpu: 0.0.40
codegen_flags: <defaults>
</compile_context>

<pallas_src>
import functools

import numpy as np
import jax
import jax.numpy as jnp
from jax.experimental import pallas as pl
from jax.experimental.pallas import tpu as pltpu

NEG_INF = float(np.finfo(np.float32).min)  # matches torch masked-softmax constant
LN_EPS = 1e-6


def _normalize_kernel(x, gain, bias, eps=LN_EPS):
    # `Normalize` module (Ingraham graph-transformer style): LayerNorm over last
    # dim with unbiased variance, eps inside sqrt and added to sigma.
    mu = jnp.mean(x, axis=-1, keepdims=True)
    xc = x - mu
    var = jnp.sum(xc * xc, axis=-1, keepdims=True) / (x.shape[-1] - 1)
    sigma = jnp.sqrt(var + eps)
    # divide -> EUP approx reciprocal + multiply (frees VPU divide sequences)
    return gain * xc * pl.reciprocal(sigma + eps, approx=True) + bias


def _normalize_ref(x, gain, bias, eps=LN_EPS):
    mu = jnp.mean(x, axis=-1, keepdims=True)
    var = jnp.sum((x - mu) ** 2, axis=-1, keepdims=True) / (x.shape[-1] - 1)
    sigma = jnp.sqrt(var + eps)
    return gain * (x - mu) / (sigma + eps) + bias


def _encoder_layer_kernel(h_v_ref, h_e_ref, mask_ref,
                          wq_ref, wkv_ref, wo_ref, hmap_ref, hmapT_ref,
                          win_ref, bin_ref, wout_ref, bout_ref,
                          g0_ref, b0_ref, g1_ref, b1_ref,
                          out_ref, *, num_heads):
    hv = h_v_ref[...]                          # (TN, H)  f32
    m = mask_ref[...]                          # (K, TN)  f32
    TN, H = hv.shape
    K = m.shape[0]
    d = H // num_heads
    scale = 1.0 / float(np.sqrt(d))

    # ---------------- NeighborAttention (fused, loop-free) ----------------
    q = jnp.dot(hv.astype(jnp.bfloat16), wq_ref[...],
                preferred_element_type=jnp.float32)                    # (TN, H)

    # fused K/V projection: one (K*TN, Din) @ (Din, 2H) matmul
    hE = h_e_ref[...].reshape(K * TN, h_e_ref.shape[-1])               # (K*TN, Din) bf16
    kv = jnp.dot(hE, wkv_ref[...], preferred_element_type=jnp.float32)  # (K*TN, 2H)
    k_all = kv[:, :H]
    v_all = kv[:, H:]

    # q*k product for all heads, then one MXU reduce against block-diag ones
    qk = (q[None, :, :] * k_all.reshape(K, TN, H)).reshape(K * TN, H)
    logits = jnp.dot(qk.astype(jnp.bfloat16), hmap_ref[...],
                     preferred_element_type=jnp.float32)               # (K*TN, nh)
    logits = logits.reshape(K, TN, num_heads) * scale

    # numerically-stable masked softmax over the K (leading) axis
    m3 = m[:, :, None]                                                 # (K, TN, 1)
    logits = jnp.where(m3 > 0, logits, NEG_INF)
    mx = jnp.max(logits, axis=0, keepdims=True)
    e = jnp.exp(logits - mx)
    s = jnp.sum(e, axis=0, keepdims=True)                              # (1, TN, nh)
    att = (e * pl.reciprocal(s, approx=True)) * m3                     # (K, TN, nh)

    # broadcast per-head weights back to H lanes with one MXU matmul, then
    # accumulate the attention-weighted V over K with full-vreg multiply-adds
    att_full = jnp.dot(att.reshape(K * TN, num_heads).astype(jnp.bfloat16),
                       hmapT_ref[...], preferred_element_type=jnp.float32)  # (K*TN, H)
    upd = jnp.sum((att_full * v_all).reshape(K, TN, H), axis=0)        # (TN, H)
    dh = jnp.dot(upd.astype(jnp.bfloat16), wo_ref[...],
                 preferred_element_type=jnp.float32)                   # W_O

    # ------------- residual + Normalize[0] (dropout = identity) -------------
    x = _normalize_kernel(hv + dh, g0_ref[...], b0_ref[...])

    # ---------- PositionWiseFeedForward (dim_ff = 4*H) ----------
    h1 = jnp.dot(x.astype(jnp.bfloat16), win_ref[...],
                 preferred_element_type=jnp.float32) + bin_ref[...]
    h1 = jnp.maximum(h1, 0.0)
    ff = jnp.dot(h1.astype(jnp.bfloat16), wout_ref[...],
                 preferred_element_type=jnp.float32) + bout_ref[...]

    # ------------- residual + Normalize[1] -------------
    out_ref[...] = _normalize_kernel(x + ff, g1_ref[...],
                                     b1_ref[...]).astype(out_ref.dtype)


def graph_transformer_encoder_layer(h_V, h_E, mask_attend, params, num_heads=4,
                                    node_tile=256):
    B, N, H = h_V.shape
    K, Din = h_E.shape[2], h_E.shape[3]
    d = H // num_heads

    # Wrapper-side (one-time) layout work: neighbor-major h_E / mask and bf16
    # matmul operands; kernel never reslices across a tile boundary per step.
    h_E_t = jnp.transpose(h_E, (0, 2, 1, 3)).astype(jnp.bfloat16)      # [B, K, N, Din]
    mask_t = jnp.transpose(mask_attend, (0, 2, 1))                     # [B, K, N]

    # fused [W_K | W_V] projection weight  (Din, 2H)
    wkv = jnp.concatenate([params["wk"], params["wv"]], axis=1).astype(jnp.bfloat16)
    # block-diagonal ones: head-reduce (H, nh) and head-expand (nh, H)
    hmap = jnp.asarray(np.arange(H)[:, None] // d == np.arange(num_heads)[None, :],
                       jnp.bfloat16)
    hmapT = jnp.transpose(hmap)

    weights = [params["wq"].astype(jnp.bfloat16), wkv,
               params["wo"].astype(jnp.bfloat16), hmap, hmapT,
               params["win"].astype(jnp.bfloat16), params["b_in"],
               params["wout"].astype(jnp.bfloat16), params["b_out"],
               params["g0"], params["b0"], params["g1"], params["b1"]]

    # Node tiling: whole graph when small, else 256-row tiles (multiple of 8 and
    # 128, >=256 matmul rows for the v6e/v7x MXU, bounded VMEM on v7x's 64 MiB).
    TN = N if N <= node_tile else node_tile
    grid = (B, pl.cdiv(N, TN))

    # NOTE: weights stay default double-buffered (pl.Buffered(1) support varies
    # across jax versions); at these configs they are small vs the h_E tiles.
    w_specs = [pl.BlockSpec(w.shape, lambda b, t: (0, 0)) for w in weights]

    kernel = functools.partial(_encoder_layer_kernel, num_heads=num_heads)
    grid_spec = pltpu.PrefetchScalarGridSpec(
        num_scalar_prefetch=0,
        grid=grid,
        in_specs=[
            pl.BlockSpec((None, TN, H), lambda b, t: (b, t, 0)),
            pl.BlockSpec((None, K, TN, Din), lambda b, t: (b, 0, t, 0)),
            pl.BlockSpec((None, K, TN), lambda b, t: (b, 0, t)),
        ] + w_specs,
        out_specs=pl.BlockSpec((None, TN, H), lambda b, t: (b, t, 0)),
    )
    return pl.pallas_call(
        kernel,
        out_shape=jax.ShapeDtypeStruct((B, N, H), h_V.dtype),
        grid_spec=grid_spec,
        compiler_params=pltpu.CompilerParams(
            dimension_semantics=("parallel", "parallel")),
    )(h_V, h_E_t, mask_t, *weights)


# ------------------- pure-JAX reference (mirrors the torch code) -------------------
def ref_forward(h_V, h_E, mask, params, num_heads=4):
    B, N, H = h_V.shape
    K = h_E.shape[2]
    d = H // num_heads
    q = (h_V @ params["wq"]).reshape(B, N, 1, num_heads, 1, d)
    k = (h_E @ params["wk"]).reshape(B, N, K, num_heads, d, 1)
    v = (h_E @ params["wv"]).reshape(B, N, K, num_heads, d)
    logits = jnp.matmul(q, k).reshape(B, N, K, num_heads)
    logits = jnp.swapaxes(logits, -2, -1) / np.sqrt(d)                 # [B,N,nh,K]
    m = mask[:, :, None, :]
    logits = jnp.where(m > 0, logits, NEG_INF)
    att = jax.nn.softmax(logits, axis=-1)
    att = m * att
    vT = jnp.swapaxes(v, -3, -2)                                       # [B,N,nh,K,d]
    upd = jnp.matmul(att[..., None, :], vT).reshape(B, N, H)
    dh = upd @ params["wo"]
    x = _normalize_ref(h_V + dh, params["g0"], params["b0"])
    ff = jnp.maximum(x @ params["win"] + params["b_in"], 0.0)
    ff = ff @ params["wout"] + params["b_out"]
    return _normalize_ref(x + ff, params["g1"], params["b1"])


def init_params(key, dim_hidden, dim_in):
    ks = jax.random.split(key, 12)
    dff = 4 * dim_hidden

    def lin(k, fan_in, fan_out):
        # stored as (in, out) == torch weight (out, in) transposed
        bound = 1.0 / np.sqrt(fan_in)
        return jax.random.uniform(k, (fan_in, fan_out), jnp.float32, -bound, bound)

    return {
        "wq": lin(ks[0], dim_hidden, dim_hidden),
        "wk": lin(ks[1], dim_in, dim_hidden),
        "wv": lin(ks[2], dim_in, dim_hidden),
        "wo": lin(ks[3], dim_hidden, dim_hidden),
        "win": lin(ks[4], dim_hidden, dff),
        "b_in": jax.random.uniform(ks[5], (1, dff), jnp.float32,
                                   -1 / np.sqrt(dim_hidden), 1 / np.sqrt(dim_hidden)),
        "wout": lin(ks[6], dff, dim_hidden),
        "b_out": jax.random.uniform(ks[7], (1, dim_hidden), jnp.float32,
                                    -1 / np.sqrt(dff), 1 / np.sqrt(dff)),
        "g0": jnp.ones((1, dim_hidden), jnp.float32)
              + 0.1 * jax.random.normal(ks[8], (1, dim_hidden), jnp.float32),
        "b0": 0.1 * jax.random.normal(ks[9], (1, dim_hidden), jnp.float32),
        "g1": jnp.ones((1, dim_hidden), jnp.float32)
              + 0.1 * jax.random.normal(ks[10], (1, dim_hidden), jnp.float32),
        "b1": 0.1 * jax.random.normal(ks[11], (1, dim_hidden), jnp.float32),
    }


if __name__ == "__main__":
    B, N, K = 2, 8, 4
    dim_hidden, dim_in, num_heads = 32, 16, 4

    key = jax.random.PRNGKey(0)
    k1, k2, k3, kp = jax.random.split(key, 4)
    h_V = jax.random.normal(k1, (B, N, dim_hidden), jnp.float32)
    h_E = jax.random.normal(k2, (B, N, K, dim_in), jnp.float32)
    mask = (jax.random.uniform(k3, (B, N, K)) > 0.3).astype(jnp.float32)
    mask = mask.at[:, :, 0].set(1.0)   # avoid fully-masked rows (NaN in torch too)
    params = init_params(kp, dim_hidden, dim_in)

    out = graph_transformer_encoder_layer(h_V, h_E, mask, params, num_heads)
    out = jax.block_until_ready(out)

    ref = ref_forward(h_V, h_E, mask, params, num_heads)
    # bf16 matmul operands in the kernel (f32 accumulation) vs f32 reference:
    # loosened tolerance per the precision change.
    np.testing.assert_allclose(np.asarray(out), np.asarray(ref), rtol=3e-2, atol=3e-2)
    print("KERNEL_OK")
</pallas_src>

<mosaic_0001>
module attributes {stable_mosaic.version = 11 : i64} {
  func.func @_encoder_layer_kernel(%arg0: i32, %arg1: i32, %arg2: memref<1x8x32xf32, #tpu.memory_space<vmem>>, %arg3: memref<1x4x8x16xbf16, #tpu.memory_space<vmem>>, %arg4: memref<1x4x8xf32, #tpu.memory_space<vmem>>, %arg5: memref<32x32xbf16, #tpu.memory_space<vmem>>, %arg6: memref<16x64xbf16, #tpu.memory_space<vmem>>, %arg7: memref<32x32xbf16, #tpu.memory_space<vmem>>, %arg8: memref<32x4xbf16, #tpu.memory_space<vmem>>, %arg9: memref<4x32xbf16, #tpu.memory_space<vmem>>, %arg10: memref<32x128xbf16, #tpu.memory_space<vmem>>, %arg11: memref<1x128xf32, #tpu.memory_space<vmem>>, %arg12: memref<128x32xbf16, #tpu.memory_space<vmem>>, %arg13: memref<1x32xf32, #tpu.memory_space<vmem>>, %arg14: memref<1x32xf32, #tpu.memory_space<vmem>>, %arg15: memref<1x32xf32, #tpu.memory_space<vmem>>, %arg16: memref<1x32xf32, #tpu.memory_space<vmem>>, %arg17: memref<1x32xf32, #tpu.memory_space<vmem>>, %arg18: memref<1x8x32xf32, #tpu.memory_space<vmem>>) attributes {dimension_semantics = [#tpu.dimension_semantics<parallel>, #tpu.dimension_semantics<parallel>], iteration_bounds = array<i64: 2, 1>, scalar_prefetch = 0 : i64, scratch_operands = 0 : i64, tpu.core_type = #tpu.core_type<tc>, window_params = [{transform_indices = @transform_0, window_bounds = array<i64: 1, 8, 32>}, {transform_indices = @transform_1, window_bounds = array<i64: 1, 4, 8, 16>}, {transform_indices = @transform_2, window_bounds = array<i64: 1, 4, 8>}, {pipeline_mode = #tpu.pipeline_mode<synchronous>, transform_indices = @transform_3, window_bounds = array<i64: 32, 32>}, {pipeline_mode = #tpu.pipeline_mode<synchronous>, transform_indices = @transform_4, window_bounds = array<i64: 16, 64>}, {pipeline_mode = #tpu.pipeline_mode<synchronous>, transform_indices = @transform_5, window_bounds = array<i64: 32, 32>}, {pipeline_mode = #tpu.pipeline_mode<synchronous>, transform_indices = @transform_6, window_bounds = array<i64: 32, 4>}, {pipeline_mode = #tpu.pipeline_mode<synchronous>, transform_indices = @transform_7, window_bounds = array<i64: 4, 32>}, {pipeline_mode = #tpu.pipeline_mode<synchronous>, transform_indices = @transform_8, window_bounds = array<i64: 32, 128>}, {pipeline_mode = #tpu.pipeline_mode<synchronous>, transform_indices = @transform_9, window_bounds = array<i64: 1, 128>}, {pipeline_mode = #tpu.pipeline_mode<synchronous>, transform_indices = @transform_10, window_bounds = array<i64: 128, 32>}, {pipeline_mode = #tpu.pipeline_mode<synchronous>, transform_indices = @transform_11, window_bounds = array<i64: 1, 32>}, {pipeline_mode = #tpu.pipeline_mode<synchronous>, transform_indices = @transform_12, window_bounds = array<i64: 1, 32>}, {pipeline_mode = #tpu.pipeline_mode<synchronous>, transform_indices = @transform_13, window_bounds = array<i64: 1, 32>}, {pipeline_mode = #tpu.pipeline_mode<synchronous>, transform_indices = @transform_14, window_bounds = array<i64: 1, 32>}, {pipeline_mode = #tpu.pipeline_mode<synchronous>, transform_indices = @transform_15, window_bounds = array<i64: 1, 32>}, {transform_indices = @transform_16, window_bounds = array<i64: 1, 8, 32>}]} {
    %c0 = arith.constant 0 : index
    %c0_0 = arith.constant 0 : index
    %c0_1 = arith.constant 0 : index
    %0 = vector.load %arg2[%c0, %c0_0, %c0_1] : memref<1x8x32xf32, #tpu.memory_space<vmem>>, vector<1x8x32xf32>
    %1 = vector.shape_cast %0 : vector<1x8x32xf32> to vector<8x32xf32>
    %c0_2 = arith.constant 0 : index
    %c0_3 = arith.constant 0 : index
    %c0_4 = arith.constant 0 : index
    %2 = vector.load %arg4[%c0_2, %c0_3, %c0_4] : memref<1x4x8xf32, #tpu.memory_space<vmem>>, vector<1x4x8xf32>
    %3 = vector.shape_cast %2 : vector<1x4x8xf32> to vector<4x8xf32>
    %4 = arith.truncf %1 : vector<8x32xf32> to vector<8x32xbf16>
    %c0_5 = arith.constant 0 : index
    %c0_6 = arith.constant 0 : index
    %5 = vector.load %arg5[%c0_5, %c0_6] : memref<32x32xbf16, #tpu.memory_space<vmem>>, vector<32x32xbf16>
    %cst = arith.constant dense<0.000000e+00> : vector<8x32xf32>
    %6 = tpu.matmul %4, %5, %cst {dimension_numbers = #tpu.dot_dimension_numbers<[1], [0], [0], [1], [0, 0, 1, 1], [], []>} : vector<8x32xbf16>, vector<32x32xbf16>, vector<8x32xf32> -> vector<8x32xf32>
    %c0_7 = arith.constant 0 : index
    %c0_8 = arith.constant 0 : index
    %c0_9 = arith.constant 0 : index
    %c0_10 = arith.constant 0 : index
    %7 = vector.load %arg3[%c0_7, %c0_8, %c0_9, %c0_10] : memref<1x4x8x16xbf16, #tpu.memory_space<vmem>>, vector<1x4x8x16xbf16>
    %8 = vector.shape_cast %7 : vector<1x4x8x16xbf16> to vector<4x8x16xbf16>
    %9 = vector.shape_cast %8 : vector<4x8x16xbf16> to vector<32x16xbf16>
    %c0_11 = arith.constant 0 : index
    %c0_12 = arith.constant 0 : index
    %10 = vector.load %arg6[%c0_11, %c0_12] : memref<16x64xbf16, #tpu.memory_space<vmem>>, vector<16x64xbf16>
    %cst_13 = arith.constant dense<0.000000e+00> : vector<32x64xf32>
    %11 = tpu.matmul %9, %10, %cst_13 {dimension_numbers = #tpu.dot_dimension_numbers<[1], [0], [0], [1], [0, 0, 1, 1], [], []>} : vector<32x16xbf16>, vector<16x64xbf16>, vector<32x64xf32> -> vector<32x64xf32>
    %12 = vector.extract_strided_slice %11 {offsets = [0, 0], sizes = [32, 32], strides = [1, 1]} : vector<32x64xf32> to vector<32x32xf32>
    %13 = vector.extract_strided_slice %11 {offsets = [0, 32], sizes = [32, 32], strides = [1, 1]} : vector<32x64xf32> to vector<32x32xf32>
    %14 = vector.shape_cast %6 : vector<8x32xf32> to vector<1x8x32xf32>
    %15 = vector.shape_cast %12 : vector<32x32xf32> to vector<4x8x32xf32>
    %16 = vector.broadcast %14 : vector<1x8x32xf32> to vector<4x8x32xf32>
    %17 = arith.mulf %16, %15 : vector<4x8x32xf32>
    %18 = vector.shape_cast %17 : vector<4x8x32xf32> to vector<32x32xf32>
    %19 = arith.truncf %18 : vector<32x32xf32> to vector<32x32xbf16>
    %c0_14 = arith.constant 0 : index
    %c0_15 = arith.constant 0 : index
    %20 = vector.load %arg8[%c0_14, %c0_15] : memref<32x4xbf16, #tpu.memory_space<vmem>>, vector<32x4xbf16>
    %cst_16 = arith.constant dense<0.000000e+00> : vector<32x4xf32>
    %21 = tpu.matmul %19, %20, %cst_16 {dimension_numbers = #tpu.dot_dimension_numbers<[1], [0], [0], [1], [0, 0, 1, 1], [], []>} : vector<32x32xbf16>, vector<32x4xbf16>, vector<32x4xf32> -> vector<32x4xf32>
    %22 = vector.shape_cast %21 : vector<32x4xf32> to vector<4x8x4xf32>
    %cst_17 = arith.constant 0.353553385 : f32
    %23 = vector.broadcast %cst_17 : f32 to vector<4x8x4xf32>
    %24 = arith.mulf %22, %23 : vector<4x8x4xf32>
    %25 = vector.shape_cast %3 : vector<4x8xf32> to vector<4x8x1xf32>
    %cst_18 = arith.constant 0.000000e+00 : f32
    %26 = vector.broadcast %cst_18 : f32 to vector<4x8x1xf32>
    %27 = arith.cmpf ogt, %25, %26 : vector<4x8x1xf32>
    %cst_19 = arith.constant -3.40282347E+38 : f32
    %28 = vector.shape_cast %27 : vector<4x8x1xi1> to vector<4x8x1xi1>
    %29 = vector.broadcast %28 : vector<4x8x1xi1> to vector<4x8x4xi1>
    %30 = vector.broadcast %cst_19 : f32 to vector<4x8x4xf32>
    %31 = arith.select %29, %24, %30 : vector<4x8x4xi1>, vector<4x8x4xf32>
    %cst_20 = arith.constant dense<0xFF800000> : vector<8x4xf32>
    %32 = vector.multi_reduction <maximumf>, %31, %cst_20 [0] : vector<4x8x4xf32> to vector<8x4xf32>
    %33 = vector.shape_cast %32 : vector<8x4xf32> to vector<1x8x4xf32>
    %34 = vector.broadcast %33 : vector<1x8x4xf32> to vector<4x8x4xf32>
    %35 = arith.subf %31, %34 : vector<4x8x4xf32>
    %36 = math.exp %35 : vector<4x8x4xf32>
    %cst_21 = arith.constant dense<0.000000e+00> : vector<8x4xf32>
    %37 = vector.multi_reduction <add>, %36, %cst_21 [0] : vector<4x8x4xf32> to vector<8x4xf32>
    %38 = vector.shape_cast %37 : vector<8x4xf32> to vector<1x8x4xf32>
    %39 = tpu.reciprocal %38 {approx = true} : vector<1x8x4xf32> -> vector<1x8x4xf32>
    %40 = vector.broadcast %39 : vector<1x8x4xf32> to vector<4x8x4xf32>
    %41 = arith.mulf %36, %40 : vector<4x8x4xf32>
    %42 = vector.broadcast %25 : vector<4x8x1xf32> to vector<4x8x4xf32>
    %43 = arith.mulf %41, %42 : vector<4x8x4xf32>
    %44 = vector.shape_cast %43 : vector<4x8x4xf32> to vector<32x4xf32>
    %45 = arith.truncf %44 : vector<32x4xf32> to vector<32x4xbf16>
    %c0_22 = arith.constant 0 : index
    %c0_23 = arith.constant 0 : index
    %46 = vector.load %arg9[%c0_22, %c0_23] : memref<4x32xbf16, #tpu.memory_space<vmem>>, vector<4x32xbf16>
    %cst_24 = arith.constant dense<0.000000e+00> : vector<32x32xf32>
    %47 = tpu.matmul %45, %46, %cst_24 {dimension_numbers = #tpu.dot_dimension_numbers<[1], [0], [0], [1], [0, 0, 1, 1], [], []>} : vector<32x4xbf16>, vector<4x32xbf16>, vector<32x32xf32> -> vector<32x32xf32>
    %48 = arith.mulf %47, %13 : vector<32x32xf32>
    %49 = vector.shape_cast %48 : vector<32x32xf32> to vector<4x8x32xf32>
    %cst_25 = arith.constant dense<0.000000e+00> : vector<8x32xf32>
    %50 = vector.multi_reduction <add>, %49, %cst_25 [0] : vector<4x8x32xf32> to vector<8x32xf32>
    %51 = arith.truncf %50 : vector<8x32xf32> to vector<8x32xbf16>
    %c0_26 = arith.constant 0 : index
    %c0_27 = arith.constant 0 : index
    %52 = vector.load %arg7[%c0_26, %c0_27] : memref<32x32xbf16, #tpu.memory_space<vmem>>, vector<32x32xbf16>
    %cst_28 = arith.constant dense<0.000000e+00> : vector<8x32xf32>
    %53 = tpu.matmul %51, %52, %cst_28 {dimension_numbers = #tpu.dot_dimension_numbers<[1], [0], [0], [1], [0, 0, 1, 1], [], []>} : vector<8x32xbf16>, vector<32x32xbf16>, vector<8x32xf32> -> vector<8x32xf32>
    %54 = arith.addf %1, %53 : vector<8x32xf32>
    %c0_29 = arith.constant 0 : index
    %c0_30 = arith.constant 0 : index
    %55 = vector.load %arg14[%c0_29, %c0_30] : memref<1x32xf32, #tpu.memory_space<vmem>>, vector<1x32xf32>
    %c0_31 = arith.constant 0 : index
    %c0_32 = arith.constant 0 : index
    %56 = vector.load %arg15[%c0_31, %c0_32] : memref<1x32xf32, #tpu.memory_space<vmem>>, vector<1x32xf32>
    %cst_33 = arith.constant dense<0.000000e+00> : vector<8xf32>
    %57 = vector.multi_reduction <add>, %54, %cst_33 [1] : vector<8x32xf32> to vector<8xf32>
    %58 = vector.shape_cast %57 : vector<8xf32> to vector<8x1xf32>
    %cst_34 = arith.constant 3.200000e+01 : f32
    %59 = vector.broadcast %cst_34 : f32 to vector<8x1xf32>
    %60 = arith.divf %58, %59 : vector<8x1xf32>
    %61 = vector.broadcast %60 : vector<8x1xf32> to vector<8x32xf32>
    %62 = arith.subf %54, %61 : vector<8x32xf32>
    %63 = arith.mulf %62, %62 : vector<8x32xf32>
    %cst_35 = arith.constant dense<0.000000e+00> : vector<8xf32>
    %64 = vector.multi_reduction <add>, %63, %cst_35 [1] : vector<8x32xf32> to vector<8xf32>
    %65 = vector.shape_cast %64 : vector<8xf32> to vector<8x1xf32>
    %cst_36 = arith.constant 3.100000e+01 : f32
    %66 = vector.broadcast %cst_36 : f32 to vector<8x1xf32>
    %67 = arith.divf %65, %66 : vector<8x1xf32>
    %cst_37 = arith.constant 9.99999997E-7 : f32
    %68 = vector.broadcast %cst_37 : f32 to vector<8x1xf32>
    %69 = arith.addf %67, %68 : vector<8x1xf32>
    %70 = math.sqrt %69 : vector<8x1xf32>
    %71 = vector.broadcast %55 : vector<1x32xf32> to vector<8x32xf32>
    %72 = arith.mulf %71, %62 : vector<8x32xf32>
    %cst_38 = arith.constant 9.99999997E-7 : f32
    %73 = vector.broadcast %cst_38 : f32 to vector<8x1xf32>
    %74 = arith.addf %70, %73 : vector<8x1xf32>
    %75 = tpu.reciprocal %74 {approx = true} : vector<8x1xf32> -> vector<8x1xf32>
    %76 = vector.broadcast %75 : vector<8x1xf32> to vector<8x32xf32>
    %77 = arith.mulf %72, %76 : vector<8x32xf32>
    %78 = vector.broadcast %56 : vector<1x32xf32> to vector<8x32xf32>
    %79 = arith.addf %77, %78 : vector<8x32xf32>
    %80 = arith.truncf %79 : vector<8x32xf32> to vector<8x32xbf16>
    %c0_39 = arith.constant 0 : index
    %c0_40 = arith.constant 0 : index
    %81 = vector.load %arg10[%c0_39, %c0_40] : memref<32x128xbf16, #tpu.memory_space<vmem>>, vector<32x128xbf16>
    %cst_41 = arith.constant dense<0.000000e+00> : vector<8x128xf32>
    %82 = tpu.matmul %80, %81, %cst_41 {dimension_numbers = #tpu.dot_dimension_numbers<[1], [0], [0], [1], [0, 0, 1, 1], [], []>} : vector<8x32xbf16>, vector<32x128xbf16>, vector<8x128xf32> -> vector<8x128xf32>
    %c0_42 = arith.constant 0 : index
    %c0_43 = arith.constant 0 : index
    %83 = vector.load %arg11[%c0_42, %c0_43] : memref<1x128xf32, #tpu.memory_space<vmem>>, vector<1x128xf32>
    %84 = vector.broadcast %83 : vector<1x128xf32> to vector<8x128xf32>
    %85 = arith.addf %82, %84 : vector<8x128xf32>
    %cst_44 = arith.constant 0.000000e+00 : f32
    %86 = vector.broadcast %cst_44 : f32 to vector<8x128xf32>
    %87 = arith.maximumf %85, %86 : vector<8x128xf32>
    %88 = arith.truncf %87 : vector<8x128xf32> to vector<8x128xbf16>
    %c0_45 = arith.constant 0 : index
    %c0_46 = arith.constant 0 : index
    %89 = vector.load %arg12[%c0_45, %c0_46] : memref<128x32xbf16, #tpu.memory_space<vmem>>, vector<128x32xbf16>
    %cst_47 = arith.constant dense<0.000000e+00> : vector<8x32xf32>
    %90 = tpu.matmul %88, %89, %cst_47 {dimension_numbers = #tpu.dot_dimension_numbers<[1], [0], [0], [1], [0, 0, 1, 1], [], []>} : vector<8x128xbf16>, vector<128x32xbf16>, vector<8x32xf32> -> vector<8x32xf32>
    %c0_48 = arith.constant 0 : index
    %c0_49 = arith.constant 0 : index
    %91 = vector.load %arg13[%c0_48, %c0_49] : memref<1x32xf32, #tpu.memory_space<vmem>>, vector<1x32xf32>
    %92 = vector.broadcast %91 : vector<1x32xf32> to vector<8x32xf32>
    %93 = arith.addf %90, %92 : vector<8x32xf32>
    %94 = arith.addf %79, %93 : vector<8x32xf32>
    %c0_50 = arith.constant 0 : index
    %c0_51 = arith.constant 0 : index
    %95 = vector.load %arg16[%c0_50, %c0_51] : memref<1x32xf32, #tpu.memory_space<vmem>>, vector<1x32xf32>
    %c0_52 = arith.constant 0 : index
    %c0_53 = arith.constant 0 : index
    %96 = vector.load %arg17[%c0_52, %c0_53] : memref<1x32xf32, #tpu.memory_space<vmem>>, vector<1x32xf32>
    %cst_54 = arith.constant dense<0.000000e+00> : vector<8xf32>
    %97 = vector.multi_reduction <add>, %94, %cst_54 [1] : vector<8x32xf32> to vector<8xf32>
    %98 = vector.shape_cast %97 : vector<8xf32> to vector<8x1xf32>
    %cst_55 = arith.constant 3.200000e+01 : f32
    %99 = vector.broadcast %cst_55 : f32 to vector<8x1xf32>
    %100 = arith.divf %98, %99 : vector<8x1xf32>
    %101 = vector.broadcast %100 : vector<8x1xf32> to vector<8x32xf32>
    %102 = arith.subf %94, %101 : vector<8x32xf32>
    %103 = arith.mulf %102, %102 : vector<8x32xf32>
    %cst_56 = arith.constant dense<0.000000e+00> : vector<8xf32>
    %104 = vector.multi_reduction <add>, %103, %cst_56 [1] : vector<8x32xf32> to vector<8xf32>
    %105 = vector.shape_cast %104 : vector<8xf32> to vector<8x1xf32>
    %cst_57 = arith.constant 3.100000e+01 : f32
    %106 = vector.broadcast %cst_57 : f32 to vector<8x1xf32>
    %107 = arith.divf %105, %106 : vector<8x1xf32>
    %cst_58 = arith.constant 9.99999997E-7 : f32
    %108 = vector.broadcast %cst_58 : f32 to vector<8x1xf32>
    %109 = arith.addf %107, %108 : vector<8x1xf32>
    %110 = math.sqrt %109 : vector<8x1xf32>
    %111 = vector.broadcast %95 : vector<1x32xf32> to vector<8x32xf32>
    %112 = arith.mulf %111, %102 : vector<8x32xf32>
    %cst_59 = arith.constant 9.99999997E-7 : f32
    %113 = vector.broadcast %cst_59 : f32 to vector<8x1xf32>
    %114 = arith.addf %110, %113 : vector<8x1xf32>
    %115 = tpu.reciprocal %114 {approx = true} : vector<8x1xf32> -> vector<8x1xf32>
    %116 = vector.broadcast %115 : vector<8x1xf32> to vector<8x32xf32>
    %117 = arith.mulf %112, %116 : vector<8x32xf32>
    %118 = vector.broadcast %96 : vector<1x32xf32> to vector<8x32xf32>
    %119 = arith.addf %117, %118 : vector<8x32xf32>
    %c0_60 = arith.constant 0 : index
    %c0_61 = arith.constant 0 : index
    %c0_62 = arith.constant 0 : index
    %120 = vector.load %arg18[%c0_60, %c0_61, %c0_62] : memref<1x8x32xf32, #tpu.memory_space<vmem>>, vector<1x8x32xf32>
    %121 = vector.shape_cast %120 : vector<1x8x32xf32> to vector<8x32xf32>
    %122 = vector.shape_cast %119 : vector<8x32xf32> to vector<1x8x32xf32>
    tpu.vector_store %arg18[%c0_60, %c0_61, %c0_62], %122 {strides = array<i32>} : memref<1x8x32xf32, #tpu.memory_space<vmem>>, vector<1x8x32xf32>,
    return
  }
  func.func @transform_0(%arg0: i32, %arg1: i32) -> (i32, i32, i32) {
    %c0_i32 = arith.constant 0 : i32
    %c0_i32_0 = arith.constant 0 : i32
    return %arg0, %arg1, %c0_i32 : i32, i32, i32
  }
  func.func @transform_1(%arg0: i32, %arg1: i32) -> (i32, i32, i32, i32) {
    %c0_i32 = arith.constant 0 : i32
    %c0_i32_0 = arith.constant 0 : i32
    %c0_i32_1 = arith.constant 0 : i32
    return %arg0, %c0_i32, %arg1, %c0_i32_0 : i32, i32, i32, i32
  }
  func.func @transform_2(%arg0: i32, %arg1: i32) -> (i32, i32, i32) {
    %c0_i32 = arith.constant 0 : i32
    %c0_i32_0 = arith.constant 0 : i32
    return %arg0, %c0_i32, %arg1 : i32, i32, i32
  }
  func.func @transform_3(%arg0: i32, %arg1: i32) -> (i32, i32) {
    %c0_i32 = arith.constant 0 : i32
    %c0_i32_0 = arith.constant 0 : i32
    %c0_i32_1 = arith.constant 0 : i32
    return %c0_i32, %c0_i32_0 : i32, i32
  }
  func.func @transform_4(%arg0: i32, %arg1: i32) -> (i32, i32) {
    %c0_i32 = arith.constant 0 : i32
    %c0_i32_0 = arith.constant 0 : i32
    %c0_i32_1 = arith.constant 0 : i32
    return %c0_i32, %c0_i32_0 : i32, i32
  }
  func.func @transform_5(%arg0: i32, %arg1: i32) -> (i32, i32) {
    %c0_i32 = arith.constant 0 : i32
    %c0_i32_0 = arith.constant 0 : i32
    %c0_i32_1 = arith.constant 0 : i32
    return %c0_i32, %c0_i32_0 : i32, i32
  }
  func.func @transform_6(%arg0: i32, %arg1: i32) -> (i32, i32) {
    %c0_i32 = arith.constant 0 : i32
    %c0_i32_0 = arith.constant 0 : i32
    %c0_i32_1 = arith.constant 0 : i32
    return %c0_i32, %c0_i32_0 : i32, i32
  }
  func.func @transform_7(%arg0: i32, %arg1: i32) -> (i32, i32) {
    %c0_i32 = arith.constant 0 : i32
    %c0_i32_0 = arith.constant 0 : i32
    %c0_i32_1 = arith.constant 0 : i32
    return %c0_i32, %c0_i32_0 : i32, i32
  }
  func.func @transform_8(%arg0: i32, %arg1: i32) -> (i32, i32) {
    %c0_i32 = arith.constant 0 : i32
    %c0_i32_0 = arith.constant 0 : i32
    %c0_i32_1 = arith.constant 0 : i32
    return %c0_i32, %c0_i32_0 : i32, i32
  }
  func.func @transform_9(%arg0: i32, %arg1: i32) -> (i32, i32) {
    %c0_i32 = arith.constant 0 : i32
    %c0_i32_0 = arith.constant 0 : i32
    %c0_i32_1 = arith.constant 0 : i32
    return %c0_i32, %c0_i32_0 : i32, i32
  }
  func.func @transform_10(%arg0: i32, %arg1: i32) -> (i32, i32) {
    %c0_i32 = arith.constant 0 : i32
    %c0_i32_0 = arith.constant 0 : i32
    %c0_i32_1 = arith.constant 0 : i32
    return %c0_i32, %c0_i32_0 : i32, i32
  }
  func.func @transform_11(%arg0: i32, %arg1: i32) -> (i32, i32) {
    %c0_i32 = arith.constant 0 : i32
    %c0_i32_0 = arith.constant 0 : i32
    %c0_i32_1 = arith.constant 0 : i32
    return %c0_i32, %c0_i32_0 : i32, i32
  }
  func.func @transform_12(%arg0: i32, %arg1: i32) -> (i32, i32) {
    %c0_i32 = arith.constant 0 : i32
    %c0_i32_0 = arith.constant 0 : i32
    %c0_i32_1 = arith.constant 0 : i32
    return %c0_i32, %c0_i32_0 : i32, i32
  }
  func.func @transform_13(%arg0: i32, %arg1: i32) -> (i32, i32) {
    %c0_i32 = arith.constant 0 : i32
    %c0_i32_0 = arith.constant 0 : i32
    %c0_i32_1 = arith.constant 0 : i32
    return %c0_i32, %c0_i32_0 : i32, i32
  }
  func.func @transform_14(%arg0: i32, %arg1: i32) -> (i32, i32) {
    %c0_i32 = arith.constant 0 : i32
    %c0_i32_0 = arith.constant 0 : i32
    %c0_i32_1 = arith.constant 0 : i32
    return %c0_i32, %c0_i32_0 : i32, i32
  }
  func.func @transform_15(%arg0: i32, %arg1: i32) -> (i32, i32) {
    %c0_i32 = arith.constant 0 : i32
    %c0_i32_0 = arith.constant 0 : i32
    %c0_i32_1 = arith.constant 0 : i32
    return %c0_i32, %c0_i32_0 : i32, i32
  }
  func.func @transform_16(%arg0: i32, %arg1: i32) -> (i32, i32, i32) {
    %c0_i32 = arith.constant 0 : i32
    %c0_i32_0 = arith.constant 0 : i32
    return %arg0, %arg1, %c0_i32 : i32, i32, i32
  }
}

</mosaic_0001>

<bundles_post_ra>
// kernel: tpu_custom_call.1
= control target key start
LH: loop header
LB: loop body
LE: loop exit
PB: predicated region body
PF: predicated region fallthrough
CT: control target
= control target key end

     0   :  { %s2323_s0 = inlined_call_operand.vmem [shape: f32[2,8,32], index: 0, kind: input, shape index: {}]   ;;  %s2324_s1 = inlined_call_operand.vmem [shape: bf16[2,4,8,16], index: 1, kind: input, shape index: {}]   ;;  %s2325_s2 = inlined_call_operand.hbm [shape: f32[2,4,8], index: 2, kind: input, shape index: {}]   ;;  %s2326_s3 = inlined_call_operand.vmem [shape: bf16[32,32], index: 3, kind: input, shape index: {}]   ;;  %s2327_s4 = inlined_call_operand.hbm [shape: bf16[16,64], index: 4, kind: input, shape index: {}]   ;;  %s2328_s5 = inlined_call_operand.vmem [shape: bf16[32,32], index: 5, kind: input, shape index: {}]   ;;  %s2329_s6 = inlined_call_operand.vmem [shape: bf16[32,4], index: 6, kind: input, shape index: {}]   ;;  %s2330_s7 = inlined_call_operand.vmem [shape: bf16[4,32], index: 7, kind: input, shape index: {}]   ;;  %s2331_s8 = inlined_call_operand.vmem [shape: bf16[32,128], index: 8, kind: input, shape index: {}]   ;;  %s2332_s9 = inlined_call_operand.vmem [shape: f32[1,128], index: 9, kind: input, shape index: {}]   ;;  %s2333_s10 = inlined_call_operand.vmem [shape: bf16[128,32], index: 10, kind: input, shape index: {}]   ;;  %s2334_s11 = inlined_call_operand.vmem [shape: f32[1,32], index: 11, kind: input, shape index: {}]   ;;  %s2335_s12 = inlined_call_operand.vmem [shape: f32[1,32], index: 12, kind: input, shape index: {}]   ;;  %s2336_s13 = inlined_call_operand.vmem [shape: f32[1,32], index: 13, kind: input, shape index: {}]   ;;  %s2337_s14 = inlined_call_operand.vmem [shape: f32[1,32], index: 14, kind: input, shape index: {}]   ;;  %s2338_s15 = inlined_call_operand.vmem [shape: f32[1,32], index: 15, kind: input, shape index: {}]   ;;  %s2339_s16 = inlined_call_operand.hbm [shape: f32[2,8,32], index: 16, kind: output, shape index: {}]  }
   0x1   :  { %2348 = sst [smem:[#allocation14_spill]] %s2323_s0 }
   0x2   :  { %2349 = sst [smem:[#allocation15_spill]] %s2325_s2 }
   0x3   :  { %2350 = sst [smem:[#allocation16_spill]] %s2327_s4 }
   0x4   :  { %2351 = sst [smem:[#allocation17_spill]] %s2332_s9 }
   0x5   :  { %2352 = sst [smem:[#allocation18_spill]] %s2334_s11 }
   0x6   :  { %2353 = sst [smem:[#allocation19_spill]] %s2336_s13 }
   0x7   :  { %2354 = sst [smem:[#allocation20_spill]] %s2337_s14 }
   0x8   :  { %2355 = sst [smem:[#allocation21_spill]] %s2338_s15 }
   0x9   :  { %2356 = sst [smem:[#allocation22_spill]] %s2339_s16 }
   0xa   :  { %21 = vsyncpa [#allocation3], 0 }
   0xb   :  { %23 = vsyncpa [#allocation3 + $0x1], 0 }
   0xc   :  { %24 = vsyncpa [#allocation6], 0 }
   0xd   :  { %25 = vsyncpa [#allocation4], 0 }
   0xe   :  { %27 = vsyncpa [#allocation4 + $0x1], 0  ;;  %s1977_s21 = smov 0   ;;  %s1979_s22 = smov 0  }
   0xf   :  { %s1981_s23 = smov 0   ;;  %s1983_s24 = smov 0  }
  0x10   :  { %s1985_s25 = smov 0   ;;  %s1987_s26 = smov 0  }
  0x11 LB: > { %2357 = sst [smem:[#allocation11_spill]] %s1862_s21  ;;  %s1477_s27 = sadd.s32 4294967295, %s1882_s26   ;;  %s1882_s26 = sphi %s1987_s26, %s33_s26   ;;  %s1878_s25 = sphi %s1985_s25, %s2391_s25   ;;  %s1874_s24 = sphi %s1983_s24, %s2390_s24   ;;  %s1870_s23 = sphi %s1981_s23, %s2389_s23   ;;  %s1866_s22 = sphi %s1979_s22, %s2388_s22   ;;  %s1862_s21 = sphi %s1977_s21, %s2387_s21  }
  0x12   : > { %s1478_s28 = sadd.s32 4294967294, %s1882_s26   ;;  %p123_p0 = scmp.ne.s32.totalorder %s1866_s22, %s1862_s21 }
  0x13   : > { %p2011_p1 = scmp.eq.s32.totalorder %s1477_s27, 0  ;;  %p2015_p2 = scmp.eq.s32.totalorder %s1477_s27, 1 }
  0x14   : > { %p428_p3 = scmp.eq.s32.totalorder %s1478_s28, 1  ;;  %p1479_p5 = scmp.ge.s32.totalorder %s1882_s26, 1 }
  0x15   : > { %s2358_s29 = scalar_select %p2011_p1, 1, 0 }
  0x16   : > { %s2359_s30 = scalar_select %p2015_p2, 1, 0 }
  0x17   : > { %p2021_p4 = por %p2011_p1, %p123_p0  ;;  %p2026_p6 = por %p428_p3, %p123_p0 }
  0x18   : > { %p435_p7 = scmp.lt.s32.totalorder %s1882_s26, 3  ;;  %s1884_s19 = smov [#allocation5]  }
  0x19   : > { %s2360_s0 = scalar_select %p2021_p4, 1, 0 }
  0x1a   : > { %s2361_s17 = scalar_select %p2026_p6, 1, 0 }
  0x1b   : > { %p2031_p8 = pnand %p1479_p5, %p435_p7  ;;  %s450_s20 = sshll.u32 %s1884_s19, 4  ;;  %s451_s20 = int_to_ptr.vmem [resolvable:$true] %s450_s20 }
  0x1c   : > { %2362 = sst [smem:[#allocation12_spill]] %s2361_s17  ;;  %s45_s28 = sadd.s32 1, %s1878_s25 }
  0x1d   : > { %s2363_s18 = scalar_select %p2031_p8, 1, 0 }
  0x1e   : > { %p1631_p9 = pneg %p2031_p8  ;;  %s2365_s4 = sld [smem:[#allocation16_spill]] }
  0x20   : > { %p2040_p11 = pnand %p1631_p9, %p2011_p1 }
  0x22   : > { %p1740_p13 = pneg %p2040_p11 }
  0x24   : > { %s1738_s16 = scalar_lea.hbm %s2365_s4, 128 }
  0x25   : > { %p1739_p12 = scmp.ne.s32.totalorder %s2365_s4, %s1738_s16  ;;  %p1745_p5 = scmp.lt.u32.totalorder %s1738_s16, %s2365_s4 }
  0x27   : > { %p1741_p0 = pnand %p1740_p13, %p1739_p12 }
  0x29   : > { %p1742_p3 = pneg %p1741_p0 }
  0x2b   : > { %p1747_p7 = pnand %p1745_p5, %p1742_p3 }
  0x2d   : > { %1750 = shalt.err (!%p1747_p7)
}
  0x2e   : > { %s1751_s9 = scalar_lea.vmem %s451_s20, 128  ;;  %p1759_p1 = scmp.lt.s32.totalorder %s451_s20, %s451_s20 }
  0x2f   : > { %p1752_p9 = scmp.ne.s32.totalorder %s451_s20, %s1751_s9  ;;  %p1760_p4 = scmp.lt.s32.totalorder %s1751_s9, %s1751_s9 }
  0x31   : > { %p1754_p10 = pnand %p1752_p9, %p1740_p13  ;;  %p1761_p8 = por %p1760_p4, %p1759_p1 }
  0x33   : > { %p1755_p6 = pneg %p1754_p10 }
  0x35   : > { %p1762_p2 = pnand %p1761_p8, %p1755_p6 }
  0x37   : > { %1765 = shalt.err (!%p1762_p2)
}
  0x38   : > { %s1885_s14 = smov 64   ;;  %s1886_s11 = smov 4  }
  0x39   : > { %1634 = dma.hbm_to_vmem [thread:$0]  (!%p2040_p11), %s2365_s4, 128, %s451_s20, [#allocation6], %s1885_s14, %s1885_s14, %s1886_s11  }
  0x3a   : > { %p47_p1 = scmp.ge.s32.totalorder %s45_s28, 2  ;;  %s110_s9 = sadd.s32 1, %s1870_s23 }
  0x3b   : > { %p117_p2 = scmp.ne.s32.totalorder %s1870_s23, %s1866_s22  ;;  %p118_p4 = scmp.eq.s32.totalorder %s1882_s26, 0 }
  0x3c   : > { %s2393_s28 = smov (%p47_p1, %s45_s28), 0  ;;  %p2368_p8 = scmp.ne.s32.totalorder %s2359_s30, 0 }
  0x3d   : > { %2366 = sst [smem:[#allocation13_spill]] %s2393_s28  ;;  %p2067_p6 = por %p118_p4, %p117_p2 }
  0x3e   : > { %p2073_p10 = por %p2368_p8, %p117_p2  ;;  %s105_s27 = ssub.s32 %s1878_s25, %s2393_s28 }
  0x3f   : > { %p1644_p12 = scmp.lt.s32.totalorder %s1882_s26, 2  ;;  %p108_p11 = scmp.eq.s32.totalorder %s105_s27, 0 }
  0x40   : > { %s518_s20 = sand.u32 1, %s1870_s23   ;;  %s1483_s11 = sshll.u32 %s1878_s25, 6 }
  0x41   : > { %s1482_s19 = sshll.u32 %s518_s20, 2  ;;  %s2370_s2 = sld [smem:[#allocation15_spill]] }
  0x42   : > { %s2082_s14 = scalar_select %p108_p11, %s1870_s23, %s110_s9  }
  0x43   : > { %s522_s30 = scalar_lea.vmem [#allocation2], %s1482_s19  ;;  %p2094_p13 = pnand %p1644_p12, %p2067_p6 }
  0x44   : > { %s530_s13 = sshll.u32 %s522_s30, 4  ;;  %s519_s9 = scalar_lea.sflag [#allocation3], %s518_s20  ;;  %s2090_s13 = int_to_ptr.vmem [resolvable:$true] %s530_s13 }
  0x45   : > { %p1768_p3 = pneg %p2094_p13 }
  0x47   : > { %s2088_s4 = scalar_lea.hbm %s2370_s2, %s1483_s11  ;;  %s1771_s15 = scalar_lea.hbm %s2370_s2, 128 }
  0x48   : > { %s1766_s28 = scalar_lea.hbm %s2088_s4, 64  ;;  %p1772_p9 = scmp.lt.u32.totalorder %s2088_s4, %s2370_s2 }
  0x49   : > { %p1767_p0 = scmp.ne.s32.totalorder %s2088_s4, %s1766_s28  ;;  %p1773_p1 = scmp.lt.u32.totalorder %s1771_s15, %s1766_s28 }
  0x4a   : > { %p1775_p4 = scmp.lt.u32.totalorder %s1766_s28, %s2088_s4 }
  0x4b   : > { %p1769_p5 = pnand %p1768_p3, %p1767_p0  ;;  %p1774_p2 = por %p1773_p1, %p1772_p9 }
  0x4d   : > { %p1770_p7 = pneg %p1769_p5  ;;  %p1776_p6 = por %p1775_p4, %p1774_p2 }
  0x4f   : > { %p1777_p8 = pnand %p1776_p6, %p1770_p7 }
  0x51   : > { %1780 = shalt.err (!%p1777_p8)
}
  0x52   : > { %s1781_s20 = scalar_lea.vmem %s2090_s13, 64  ;;  %s1887_s30 = smov [#allocation2]  }
  0x53   : > { %p1782_p12 = scmp.ne.s32.totalorder %s2090_s13, %s1781_s20  ;;  %s1786_s19 = sshll.u32 %s1887_s30, 4  ;;  %s1787_s19 = int_to_ptr.vmem [resolvable:$false] %s1786_s19 }
  0x54   : > { %s1788_s11 = scalar_lea.vmem %s1787_s19, 128  ;;  %p1789_p5 = scmp.lt.s32.totalorder %s2090_s13, %s1787_s19 }
  0x55   : > { %p1784_p11 = pnand %p1782_p12, %p1768_p3  ;;  %p1790_p9 = scmp.lt.s32.totalorder %s1788_s11, %s1781_s20 }
  0x57   : > { %p1785_p0 = pneg %p1784_p11  ;;  %p1791_p1 = por %p1790_p9, %p1789_p5 }
  0x59   : > { %p1792_p2 = pnand %p1791_p1, %p1785_p0 }
  0x5b   : > { %1795 = shalt.err (!%p1792_p2)
}
  0x5c   : > { %1638 = dma.hbm_to_vmem [thread:$0]  (!%p2094_p13), %s2088_s4, 64, %s2090_s13, %s519_s9  }
  0x5d   : > { %p2372_p7 = scmp.ne.s32.totalorder %s2363_s18, 0 }
  0x5e   : > { %s2126_s28 = sand.u32 (!%p2372_p7), 1, %s1866_s22   ;;  %p2373_p3 = scmp.ne.s32.totalorder (!%p2372_p7), %s2360_s0, 0 }
  0x5f   : > { %539 = sbr.rel (%p2372_p7) target bundleno = 2154 (0x86a), region = 84  ;;  %s1485_s15 = sshll.u32 (!%p2372_p7), %s2126_s28, 2 }
  0x60   : > { %s542_s21 = scalar_lea.sflag (!%p2372_p7), [#allocation3], %s2126_s28  ;;  %s2130_s16 = scalar_lea.vmem (!%p2372_p7), [#allocation2], %s1485_s15 }
  0x66   : > { %1849 = dma.done.wait (%p2373_p3), %s542_s21, 64  }
  0x67   : > { %1851 = vsyncadd (%p2373_p3), %s542_s21, 4294967232  ;;  %p2374_p13 = scmp.ne.s32.totalorder %s2358_s29, 0 }
  0x69   : > { %1853 = dma.done.wait (%p2374_p13), [#allocation6], 128  }
  0x6a   : > { %1855 = vsyncadd (%p2374_p13), [#allocation6], 4294967168  ;;  %p613_p4 = scmp.lt.s32.totalorder %s1874_s24, 1  ;;  %v1888_v0 = vmov 0.0   ;;  %vm1889_vm0 = vmmov 0   ;;  %s2375_s18 = sld [smem:[#allocation14_spill]]  ;;  %v851_v8 = vlaneseq }
  0x6b   : > { %1558 = vmatprep.subr.bf16.mxu0 %v1888_v0  ;;  %1562 = vmatprep.mubr.msk.bf16.mxu0 %vm1889_vm0, %v1888_v0  ;;  %v1701_v1 = vld [vmem:[%s2326_s3] sm:$0xff]   ;;  %v1702_v2 = vld [vmem:[%s2326_s3 + $0x8] sm:$0xff]   ;;  %vm648_vm1 = vcmask 261120   ;;  %vm714_vm2 = vcmask 130048   ;;  %vm940_vm3 = vcmask 1041408   ;;  %vm895_vm8 = vcmask 31744  }
  0x6c   : > { %s614_s4 = scalar_select %p613_p4, %s1874_s24, 1  ;;  %1586 = vmatprep.subr.bf16.mxu1 %v1888_v0  ;;  %1590 = vmatprep.mubr.msk.bf16.mxu1 %vm1889_vm0, %v1888_v0  ;;  %v1703_v4 = vld [vmem:[#allocation5] sm:$0xff]   ;;  %v852_v9 = vshrl.u32 %v851_v8, 7  ;;  %v630_v11 = vld [vmem:[%s2130_s16] sm:$0xf] }
  0x6d   : > { %1559 = vmatpush3.bf16.msra.mxu0 %v1701_v1  ;;  %v1706_v19 = vld [vmem:[%s2329_s6] sm:$0xff]   ;;  %v1707_v20 = vld [vmem:[%s2329_s6 + $0x8] sm:$0xff]   ;;  %s1890_s16 = smov 96   ;;  %s2378_s19 = sld [smem:[#allocation18_spill]] }
  0x6e   : > { %s1488_s13 = sshll.u32 %s614_s4, 3  ;;  %s1529_s9 = sshll.u32 %s614_s4, 4  ;;  %1560 = vmatprep.subr.bf16.mxu0 %v1888_v0  ;;  %v853_v10 = vsub.s32 0, %v852_v9  ;;  %v867_v13 = vsub.s32 2, %v852_v9  ;;  %v860_v15 = vsub.s32 1, %v852_v9  ;;  %v874_v16 = vsub.s32 3, %v852_v9 }
  0x6f   : > { %s627_s2 = scalar_lea.vmem %s2324_s1, %s1529_s9  ;;  %v933_v35 = vld [vmem:[%s2330_s7] sm:$0x3]  ;;  %s2377_s9 = sld [smem:[#allocation17_spill]] }
  0x70   : > { %s619_s27 = scalar_lea.vmem %s2375_s18, %s1488_s13  ;;  %v1704_v6 = vld [vmem:[%s627_s2] sm:$0xff]   ;;  %v1705_v7 = vld [vmem:[%s627_s2 + $0x8] sm:$0xff]   ;;  %v854_v12 = vrot.slane %v630_v11, %v853_v10  ;;  %v868_v14 = vrot.slane %v630_v11, %v867_v13  ;;  %v861_v17 = vrot.slane %v630_v11, %v860_v15  ;;  %v875_v18 = vrot.slane %v630_v11, %v874_v16  ;;  %s2376_s13 = sld [smem:[#allocation19_spill]] }
  0x71   : > { %v2157_v3 = vld [vmem:[%s619_s27] sm:$0xff]  ;;  %1561 = vmatpush3.bf16.msra.mxu0 %v1702_v2  ;;  %v942_v36 = vsel %vm940_vm3, %v933_v35, 0  ;;  %s1487_s11 = sshll.u32 %s2126_s28, 3  ;;  %s2379_s4 = sld [smem:[#allocation20_spill]] }
  0x72   : > { %v631_v5 = vpack.c.bf16 %v2157_v3, %v2157_v3  ;;  %1566 = vmatprep.subr.bf16.mxu0 %v1703_v4  ;;  %856 = vbcast.lane.b32.xlu0 %v854_v12, 256  ;;  %s2380_s0 = sld [smem:[#allocation21_spill]]  ;;  %s612_s29 = scalar_lea.vmem [#allocation7], %s1487_s11 }
  0x73   : > { %870 = vbcast.lane.b32.xlu1 %v868_v14, 256  ;;  %s1354_s18 = sshll.u32 %s612_s29, 4  ;;  %s2381_s20 = sld [smem:[#allocation22_spill]]  ;;  %s2275_s18 = int_to_ptr.vmem [resolvable:$true] %s1354_s18 }
  0x74   : > { %1563 = vmatmul.mubr.msk.bf16.vlgmr.msra.gmra.mrb[0].mxu0 %vm648_vm1, %v631_v5  ;;  %s1796_s15 = scalar_lea.vmem %s2275_s18, 128 }
  0x75   : > { %1567 = vmatpush3.bf16.msra.mxu0 %v1703_v4  ;;  %1568 = vmatprep.mubr.msk.bf16.mxu0 %vm714_vm2, %v1704_v6  ;;  %p1797_p6 = scmp.ne.s32.totalorder %s2275_s18, %s1796_s15 }
  0x76   : > { %863 = vbcast.lane.b32.xlu0 %v861_v17, 256  ;;  %1572 = vmatprep.subr.bf16.mxu0 %v1706_v19 }
  0x77   : > { %877 = vbcast.lane.b32.xlu1 %v875_v18, 256  ;;  %p1798_p8 = pnand %p1797_p6, %p2073_p10 }
  0x79   : > { %p1799_p12 = pneg %p1798_p8 }
  0x7c   : > { %1569 = vmatmul.mubr.msk.bf16.vlgmr.msra.gmra.mrb[4].mxu0 %vm714_vm2, %v1705_v7 }
  0x7d   : > { %1573 = vmatpush3.bf16.msra.mxu0 %v1706_v19 }
  0x7e   : > { %1574 = vmatprep.subr.bf16.mxu0 %v1707_v20 }
  0x81   : > { %1575 = vmatpush3.bf16.msra.mxu0 %v1707_v20 }
  0x82   : > { %1622 = vmatprep.subr.msk.bf16.mxu0 %vm940_vm3, %v933_v35 }
  0xe4   : > { %v857_v37 = vpop.permute.xlu0 %856 }
  0xe5   : > { %v871_v38 = vpop.permute.xlu1 %870  ;;  %vm879_vm5 = vcmp.gt.f32.partialorder %v857_v37, 0.0 }
  0xe6   : > { %vm881_vm4 = vcmp.gt.f32.partialorder %v871_v38, 0.0 }
  0xe8   : > { %v864_v39 = vpop.permute.xlu0 %863 }
  0xe9   : > { %v878_v41 = vpop.permute.xlu1 %877  ;;  %vm880_vm6 = vcmp.gt.f32.partialorder %v864_v39, 0.0 }
  0xea   : > { %vm882_vm7 = vcmp.gt.f32.partialorder %v878_v41, 0.0 }
 0x147   : > { %v686_v21 = vpop.f32.mrb[0].mxu0 }
 0x148   : > { %v1564_v22 = vpop.f32.mrb[1].mxu0 }
 0x149   : > { %v689_v23 = vpop.f32.mrb[2].mxu0 }
 0x14a   : > { %v1565_v24 = vpop.f32.mrb[3].mxu0 }
 0x14f   : > { %v1570_v25 = vpop.f32.mrb[4].mxu0 }
 0x150   : > { %v772_v26 = vmul.f32 %v1570_v25, %v686_v21  ;;  %v755_v27 = vpop.f32.mrb[5].mxu0 }
 0x151   : > { %v770_v28 = vmul.f32 %v755_v27, %v686_v21  ;;  %997 = vrot.lane.b32.xlu0 %v755_v27, %s1890_s16  ;;  %v1571_v29 = vpop.f32.mrb[6].mxu0 }
 0x152   : > { %v773_v30 = vmul.f32 %v1571_v29, %v686_v21  ;;  %v758_v31 = vpop.f32.mrb[7].mxu0 }
 0x153   : > { %v771_v32 = vmul.f32 %v758_v31, %v686_v21  ;;  %999 = vrot.lane.b32.xlu1 %v758_v31, %s1890_s16 }
 0x154   : > { %v775_v33 = vpack.c.bf16 %v773_v30, %v772_v26 }
 0x155   : > { %v774_v34 = vpack.c.bf16 %v771_v32, %v770_v28  ;;  %1001 = vrot.lane.b32.xlu0 %v1570_v25, %s1890_s16  ;;  %v1708_v28 = vld [vmem:[%s2328_s5] sm:$0xff]  }
 0x156   : > { %1587 = vmatpush3.bf16.msra.mxu1 %v1708_v28 }
 0x157   : > { %1003 = vrot.lane.b32.xlu1 %v1571_v29, %s1890_s16  ;;  %1576 = vmatprep.mubr.msk.bf16.mxu0 %vm648_vm1, %v774_v34  ;;  %v1709_v29 = vld [vmem:[%s2328_s5 + $0x8] sm:$0xff]   ;;  %s1526_s16 = sshll.u32 %s1874_s24, 7  ;;  %s1891_s24 = smov [#allocation7]  }
 0x158   : > { %1577 = vmatmul.mubr.msk.bf16.vlgmr.msra.gmra.mrb[8].mxu0 %vm648_vm1, %v775_v33  ;;  %1588 = vmatprep.subr.bf16.mxu1 %v1888_v0  ;;  %s2273_s30 = scalar_lea.hbm %s2381_s20, %s1526_s16  ;;  %s1800_s11 = sshll.u32 %s1891_s24, 4  ;;  %s1801_s11 = int_to_ptr.vmem [resolvable:$false] %s1800_s11 }
 0x159   : > { %1581 = vmatpush3.bf16.msra.mxu0 %v942_v36  ;;  %s1802_s21 = scalar_lea.vmem %s1801_s11, 256  ;;  %p1803_p11 = scmp.lt.s32.totalorder %s2275_s18, %s1801_s11 }
 0x15a   : > { %1594 = vmatprep.subr.bf16.mxu0 %v1888_v0  ;;  %1589 = vmatpush3.bf16.msra.mxu1 %v1709_v29  ;;  %p1804_p0 = scmp.lt.s32.totalorder %s1802_s21, %s1796_s15 }
 0x15b   : > { %1602 = vmatprep.subr.bf16.mxu1 %v1888_v0 }
 0x15c   : > { %p1805_p5 = por %p1804_p0, %p1803_p11 }
 0x15e   : > { %p1806_p9 = pnand %p1805_p5, %p1799_p12 }
 0x1c3   : > { %v998_v30 = vpop.permute.xlu0 %997 }
 0x1c5   : > { %v1000_v31 = vpop.permute.xlu1 %999 }
 0x1c7   : > { %v1002_v36 = vpop.permute.xlu0 %1001 }
 0x22b   : > { %v1578_v40 = vpop.f32.mrb[8].mxu0 }
 0x22c   : > { %v849_v42 = vmul.f32 0.35355338, %v1578_v40  ;;  %v832_v43 = vpop.f32.mrb[9].mxu0  ;;  %v1004_v40 = vpop.permute.xlu1 %1003 }
 0x22d   : > { %v847_v44 = vmul.f32 0.35355338, %v832_v43  ;;  %v1579_v45 = vpop.f32.mrb[10].mxu0 }
 0x22e   : > { %v893_v46 = vsel %vm881_vm4, %v849_v42, -3.4028235e+38  ;;  %v850_v47 = vmul.f32 0.35355338, %v1579_v45  ;;  %v835_v48 = vpop.f32.mrb[11].mxu0 }
 0x22f   : > { %v891_v49 = vsel %vm879_vm5, %v847_v44, -3.4028235e+38  ;;  %v848_v50 = vmul.f32 0.35355338, %v835_v48  ;;  %v898_v52 = vsel %vm895_vm8, %v893_v46, -inf }
 0x230   : > { %v894_v51 = vsel %vm882_vm7, %v850_v47, -3.4028235e+38  ;;  %v896_v55 = vsel %vm895_vm8, %v891_v49, -inf }
 0x231   : > { %v899_v53 = vsel %vm895_vm8, %v894_v51, -inf  ;;  %v892_v54 = vsel %vm880_vm6, %v848_v50, -3.4028235e+38 }
 0x232   : > { %v901_v56 = vmax.f32 %v898_v52, %v899_v53  ;;  %v897_v57 = vsel %vm895_vm8, %v892_v54, -inf }
 0x233   : > { %v900_v58 = vmax.f32 %v896_v55, %v897_v57 }
 0x235   : > { %v902_v59 = vmax.f32 %v900_v58, %v901_v56 }
 0x237   : > { %v903_v60 = vsub.f32 %v891_v49, %v902_v59  ;;  %v904_v61 = vsub.f32 %v892_v54, %v902_v59  ;;  %v905_v62 = vsub.f32 %v893_v46, %v902_v59  ;;  %v906_v63 = vsub.f32 %v894_v51, %v902_v59 }
 0x239   : > { %v907_v1 = vmul.f32 1.442695, %v903_v60  ;;  %v909_v2 = vmul.f32 1.442695, %v904_v61  ;;  %v911_v4 = vmul.f32 1.442695, %v905_v62 }
 0x23a   : > { %v913_v5 = vmul.f32 1.442695, %v906_v63  ;;  %v1710_v61 = vld [vmem:[%s2331_s8] sm:$0xff]   ;;  %v1713_v63 = vld [vmem:[%s2333_s10 + $0x8] sm:$0xff]  }
 0x23b   : > { %1720 = vpow2.f32 %v907_v1  ;;  %v1712_v62 = vld [vmem:[%s2333_s10] sm:$0xff]   ;;  %v1714_v1 = vld [vmem:[%s2333_s10 + $0x10] sm:$0xff]  }
 0x23c   : > { %1722 = vpow2.f32 %v909_v2  ;;  %v1715_v2 = vld [vmem:[%s2333_s10 + $0x18] sm:$0xff]  }
 0x23d   : > { %1724 = vpow2.f32 %v911_v4  ;;  %v1716_v4 = vld [vmem:[%s2333_s10 + $0x20] sm:$0xff]  }
 0x23e   : > { %1726 = vpow2.f32 %v913_v5  ;;  %v1717_v5 = vld [vmem:[%s2333_s10 + $0x28] sm:$0xff]  }
 0x245   : > { %v1721_v6 = vpop.eup %1720 }
 0x246   : > { %v1723_v7 = vpop.eup %1722  ;;  %v915_v8 = vsel %vm895_vm8, %v1721_v6, 0.0 }
 0x247   : > { %v1725_v9 = vpop.eup %1724  ;;  %v916_v10 = vsel %vm895_vm8, %v1723_v7, 0.0 }
 0x248   : > { %v1727_v11 = vpop.eup %1726  ;;  %v917_v12 = vadd.f32 %v916_v10, %v915_v8  ;;  %v918_v13 = vsel %vm895_vm8, %v1725_v9, 0.0 }
 0x249   : > { %v920_v15 = vsel %vm895_vm8, %v1727_v11, 0.0 }
 0x24a   : > { %v919_v14 = vadd.f32 %v918_v13, %v917_v12 }
 0x24c   : > { %v921_v16 = vadd.f32 %v920_v15, %v919_v14  ;;  %v1508_v15 = vld [vmem:[%s2335_s12] ss:$0 sm:$0xff] }
 0x24e   : > { %1728 = vrcp.f32 %v921_v16 }
 0x258   : > { %v1729_v17 = vpop.eup %1728 }
 0x259   : > { %v923_v18 = vmul.f32 %v1729_v17, %v1721_v6  ;;  %v924_v19 = vmul.f32 %v1729_v17, %v1723_v7  ;;  %v925_v20 = vmul.f32 %v1729_v17, %v1725_v9  ;;  %v926_v21 = vmul.f32 %v1729_v17, %v1727_v11 }
 0x25b   : > { %v927_v22 = vmul.f32 %v923_v18, %v857_v37  ;;  %v928_v23 = vmul.f32 %v924_v19, %v864_v39  ;;  %v929_v24 = vmul.f32 %v925_v20, %v871_v38  ;;  %v930_v25 = vmul.f32 %v926_v21, %v878_v41  ;;  %v1509_v18 = vld [vmem:[%s2376_s13] ss:$0 sm:$0xff] }
 0x25d   : > { %v931_v26 = vpack.c.bf16 %v928_v23, %v927_v22  ;;  %v932_v27 = vpack.c.bf16 %v930_v25, %v929_v24  ;;  %v1718_v22 = vld [vmem:[%s2333_s10 + $0x30] sm:$0xff]   ;;  %v1719_v23 = vld [vmem:[%s2333_s10 + $0x38] sm:$0xff]   ;;  %v1510_v24 = vld [vmem:[%s2377_s9] ss:$0 sm:$0xff] }
 0x25f   : > { %1582 = vmatprep.mubr.msk.bf16.mxu0 %vm895_vm8, %v931_v26 }
 0x260   : > { %1583 = vmatmul.mubr.msk.bf16.vlgmr.msra.gmra.mrb[12].mxu0 %vm895_vm8, %v932_v27 }
 0x261   : > { %1598 = vmatprep.mubr.msk.bf16.mxu0 %vm1889_vm0, %v1888_v0  ;;  %1595 = vmatpush3.bf16.msra.mxu0 %v1710_v61 }
 0x262   : > { %1596 = vmatprep.subr.bf16.mxu0 %v1888_v0 }
 0x333   : > { %v1584_v32 = vpop.f32.mrb[12].mxu0 }
 0x334   : > { %v978_v33 = vpop.f32.mrb[13].mxu0  ;;  %v1011_v38 = vmul.f32 %v1584_v32, %v1002_v36 }
 0x335   : > { %v1009_v34 = vmul.f32 %v998_v30, %v978_v33  ;;  %v1585_v35 = vpop.f32.mrb[14].mxu0 }
 0x336   : > { %v981_v37 = vpop.f32.mrb[15].mxu0  ;;  %v1012_v42 = vmul.f32 %v1585_v35, %v1004_v40  ;;  %v1016_v45 = vsel %vm648_vm1, %v1011_v38, 0.0 }
 0x337   : > { %v1010_v39 = vmul.f32 %v1000_v31, %v981_v37  ;;  %v1013_v41 = vsel %vm648_vm1, %v1009_v34, 0.0 }
 0x338   : > { %v1018_v47 = vsel %vm648_vm1, %v1012_v42, 0.0 }
 0x339   : > { %v1014_v43 = vsel %vm648_vm1, %v1010_v39, 0.0 }
 0x33a   : > { %v1015_v44 = vadd.f32 %v1014_v43, %v1013_v41 }
 0x33c   : > { %v1017_v46 = vadd.f32 %v1016_v45, %v1015_v44 }
 0x33e   : > { %v1019_v48 = vadd.f32 %v1018_v47, %v1017_v46 }
 0x340   : > { %v1020_v49 = vpack.c.bf16 %v1019_v48, %v1019_v48 }
 0x342   : > { %1591 = vmatmul.mubr.msk.bf16.vlgmr.msra.gmra.mrb[0].mxu1 %vm648_vm1, %v1020_v49 }
 0x343   : > { %1618 = vmatprep.mubr.msk.bf16.mxu1 %vm1889_vm0, %v1888_v0  ;;  %1603 = vmatpush3.bf16.msra.mxu1 %v1712_v62 }
 0x344   : > { %1604 = vmatprep.subr.bf16.mxu1 %v1888_v0 }
 0x347   : > { %1605 = vmatpush3.bf16.msra.mxu1 %v1713_v63 }
 0x348   : > { %1606 = vmatprep.subr.bf16.mxu1 %v1888_v0 }
 0x34b   : > { %1607 = vmatpush3.bf16.msra.mxu1 %v1714_v1 }
 0x34c   : > { %1608 = vmatprep.subr.bf16.mxu1 %v1888_v0 }
 0x34f   : > { %1609 = vmatpush3.bf16.msra.mxu1 %v1715_v2 }
 0x350   : > { %1610 = vmatprep.subr.bf16.mxu1 %v1888_v0 }
 0x353   : > { %1611 = vmatpush3.bf16.msra.mxu1 %v1716_v4 }
 0x354   : > { %1612 = vmatprep.subr.bf16.mxu1 %v1888_v0 }
 0x357   : > { %1613 = vmatpush3.bf16.msra.mxu1 %v1717_v5 }
 0x358   : > { %1614 = vmatprep.subr.bf16.mxu1 %v1888_v0 }
 0x35b   : > { %1615 = vmatpush3.bf16.msra.mxu1 %v1718_v22 }
 0x35c   : > { %1616 = vmatprep.subr.bf16.mxu1 %v1888_v0  ;;  %v1514_v0 = vld [vmem:[%s2378_s19] ss:$0 sm:$0xff]  ;;  %s1340_s19 = scalar_lea.sflag [#allocation4], %s2126_s28 }
 0x35f   : > { %1617 = vmatpush3.bf16.msra.mxu1 %v1719_v23 }
 0x415   : > { %v1074_v50 = vpop.f32.mrb[0].mxu1 }
 0x416   : > { %v1080_v51 = vadd.f32 %v1074_v50, %v2157_v3  ;;  %v1592_v52 = vpop.f32.mrb[1].mxu1  ;;  %v1711_v3 = vld [vmem:[%s2331_s8 + $0x8] sm:$0xff]  }
 0x417   : > { %v1077_v53 = vpop.f32.mrb[2].mxu1  ;;  %1597 = vmatpush3.bf16.msra.mxu0 %v1711_v3 }
 0x418   : > { %v1593_v54 = vpop.f32.mrb[3].mxu1  ;;  %v1083_v55 = vsel %vm648_vm1, %v1080_v51, 0.0  ;;  %v1523_v53 = vld [vmem:[%s2379_s4] ss:$0 sm:$0xff] }
 0x419   : > { %1084 = vadd.xlane.f32.xlu0 %v1083_v55 }
 0x4a6   : > { %v1085_v56 = vpop.xlane.xlu0 %1084 }
 0x4a7   : > { %v1087_v57 = vmul.f32 0.03125, %v1085_v56  ;;  %v1524_v56 = vld [vmem:[%s2380_s0] ss:$0 sm:$0xff] }
 0x4a9   : > { %v1088_v58 = vsub.f32 %v1080_v51, %v1087_v57 }
 0x4ab   : > { %v1089_v59 = vmul.f32 %v1088_v58, %v1088_v58  ;;  %v1109_v16 = vmul.f32 %v1508_v15, %v1088_v58 }
 0x4ad   : > { %v1090_v60 = vsel %vm648_vm1, %v1089_v59, 0.0 }
 0x4ae   : > { %1091 = vadd.xlane.f32.xlu1 %v1090_v60 }
 0x53b   : > { %v1092_v6 = vpop.xlane.xlu1 %1091 }
 0x53c   : > { %v1094_v7 = vmul.f32 0.032258064, %v1092_v6 }
 0x53e   : > { %v1095_v8 = vadd.f32 1e-06, %v1094_v7 }
 0x540   : > { %1730 = vrsqrt.f32 %v1095_v8  ;;  %vm1098_vm9 = vcmp.eq.f32.partialorder %v1095_v8, inf  ;;  %v1101_v11 = vand.u32 2147483648, %v1095_v8  ;;  %vm1100_vm10 = vcmp.eq.f32.partialorder %v1095_v8, 0.0 }
 0x54a   : > { %v1731_v9 = vpop.eup %1730 }
 0x54b   : > { %v1097_v10 = vmul.f32 %v1731_v9, %v1095_v8 }
 0x54d   : > { %v1099_v12 = vsel %vm1098_vm9, %v1095_v8, %v1097_v10 }
 0x54e   : > { %v1102_v13 = vsel %vm1100_vm10, %v1101_v11, %v1099_v12 }
 0x54f   : > { %v1110_v14 = vadd.f32 1e-06, %v1102_v13 }
 0x551   : > { %1732 = vrcp.f32 %v1110_v14 }
 0x55b   : > { %v1733_v17 = vpop.eup %1732 }
 0x55c   : > { %v1112_v19 = vmul.f32 %v1733_v17, %v1109_v16 }
 0x55e   : > { %v1119_v20 = vadd.f32 %v1509_v18, %v1112_v19 }
 0x560   : > { %v1120_v21 = vpack.c.bf16 %v1119_v20, %v1119_v20 }
 0x562   : > { %1599 = vmatmul.mubr.msk.bf16.vlgmr.msra.gmra.mrb[16].mxu0 %vm648_vm1, %v1120_v21 }
 0x635   : > { %v1181_v25 = vpop.f32.mrb[16].mxu0 }
 0x636   : > { %v1182_v26 = vadd.f32 %v1510_v24, %v1181_v25  ;;  %v1600_v27 = vpop.f32.mrb[17].mxu0 }
 0x637   : > { %v1184_v28 = vpop.f32.mrb[18].mxu0 }
 0x638   : > { %v1187_v29 = vmax.f32 %v1182_v26, 0.0  ;;  %v1601_v30 = vpop.f32.mrb[19].mxu0 }
 0x63a   : > { %v1188_v31 = vpack.c.bf16 %v1187_v29, %v1187_v29 }
 0x63c   : > { %1619 = vmatmul.mubr.bf16.vlgmr.msra.gmra.mrb[4].mxu1 %v1188_v31 }
 0x70f   : > { %v1294_v32 = vpop.f32.mrb[4].mxu1 }
 0x710   : > { %v1295_v33 = vadd.f32 %v1514_v0, %v1294_v32  ;;  %v1620_v34 = vpop.f32.mrb[5].mxu1 }
 0x711   : > { %v1297_v35 = vpop.f32.mrb[6].mxu1 }
 0x712   : > { %v1621_v36 = vpop.f32.mrb[7].mxu1  ;;  %v1300_v37 = vadd.f32 %v1295_v33, %v1119_v20 }
 0x714   : > { %v1303_v38 = vsel %vm648_vm1, %v1300_v37, 0.0 }
 0x715   : > { %1304 = vadd.xlane.f32.xlu0 %v1303_v38 }
 0x7a2   : > { %v1305_v39 = vpop.xlane.xlu0 %1304 }
 0x7a3   : > { %v1306_v40 = vmul.f32 0.03125, %v1305_v39 }
 0x7a5   : > { %v1307_v41 = vsub.f32 %v1300_v37, %v1306_v40 }
 0x7a7   : > { %v1308_v42 = vmul.f32 %v1307_v41, %v1307_v41  ;;  %v1327_v54 = vmul.f32 %v1523_v53, %v1307_v41 }
 0x7a9   : > { %v1309_v43 = vsel %vm648_vm1, %v1308_v42, 0.0 }
 0x7aa   : > { %1310 = vadd.xlane.f32.xlu0 %v1309_v43 }
 0x837   : > { %v1311_v44 = vpop.xlane.xlu0 %1310 }
 0x838   : > { %v1312_v45 = vmul.f32 0.032258064, %v1311_v44 }
 0x83a   : > { %v1313_v46 = vadd.f32 1e-06, %v1312_v45 }
 0x83c   : > { %1734 = vrsqrt.f32 %v1313_v46  ;;  %vm1316_vm11 = vcmp.eq.f32.partialorder %v1313_v46, inf  ;;  %v1319_v49 = vand.u32 2147483648, %v1313_v46  ;;  %vm1318_vm12 = vcmp.eq.f32.partialorder %v1313_v46, 0.0 }
 0x846   : > { %v1735_v47 = vpop.eup %1734 }
 0x847   : > { %v1315_v48 = vmul.f32 %v1735_v47, %v1313_v46 }
 0x849   : > { %v1317_v50 = vsel %vm1316_vm11, %v1313_v46, %v1315_v48 }
 0x84a   : > { %v1320_v51 = vsel %vm1318_vm12, %v1319_v49, %v1317_v50 }
 0x84b   : > { %v1328_v52 = vadd.f32 1e-06, %v1320_v51 }
 0x84d   : > { %1736 = vrcp.f32 %v1328_v52 }
 0x857   : > { %v1737_v55 = vpop.eup %1736 }
 0x858   : > { %v1330_v57 = vmul.f32 %v1737_v55, %v1327_v54 }
 0x85a   : > { %v1337_v58 = vadd.f32 %v1524_v56, %v1330_v57 }
 0x85c   : > { %1338 = vst.msk [vmem:[%s612_s29] sm:$0xff] %vm648_vm1, %v1337_v58 }
 0x85d   : > { %1809 = shalt.err (!%p1806_p9)
}
 0x85e   : > { %s1810_s28 = scalar_lea.hbm %s2273_s30, 128  ;;  %s1814_s2 = scalar_lea.hbm %s2381_s20, 256 }
 0x85f   : > { %p1811_p1 = scmp.ne.s32.totalorder %s2273_s30, %s1810_s28  ;;  %p1815_p3 = scmp.lt.u32.totalorder %s2273_s30, %s2381_s20 }
 0x860   : > { %p1816_p13 = scmp.lt.u32.totalorder %s1814_s2, %s1810_s28  ;;  %p1818_p6 = scmp.lt.u32.totalorder %s1810_s28, %s2273_s30 }
 0x861   : > { %p1812_p2 = pnand %p1811_p1, %p2073_p10 }
 0x862   : > { %p1817_p4 = por %p1816_p13, %p1815_p3 }
 0x863   : > { %p1813_p7 = pneg %p1812_p2 }
 0x864   : > { %p1819_p8 = por %p1818_p6, %p1817_p4 }
 0x866   : > { %p1820_p12 = pnand %p1819_p8, %p1813_p7 }
 0x868   : > { %1823 = shalt.err (!%p1820_p12)
}
 0x869   : > { %1629 = dma.vmem_to_hbm [thread:$0]  (%p2073_p10), %s2275_s18, 128, %s2273_s30, %s1340_s19  }
 0x86a PF: > { %s2382_s29 = sld [smem:[#allocation11_spill]]  ;;  %s2383_s27 = sld [smem:[#allocation12_spill]] }
 0x86b   : > { %p2385_p0 = scmp.ge.s32.totalorder %s1882_s26, 2 }
 0x870   : > { %s1366_s9 = sand.u32 1, %s2382_s29   ;;  %p2384_p11 = scmp.ne.s32.totalorder %s2383_s27, 0 }
 0x871   : > { %s1367_s15 = scalar_lea.sflag [#allocation4], %s1366_s9 }
 0x872   : > { %p1640_p5 = pnand %p2385_p0, %p2384_p11 }
 0x874   : > { %1857 = dma.done.wait (!%p1640_p5), %s1367_s15, 128  }
 0x875   : > { %1859 = vsyncadd (!%p1640_p5), %s1367_s15, 4294967168  ;;  %s33_s26 = sadd.s32 1, %s1882_s26   ;;  %s2386_s17 = sld [smem:[#allocation13_spill]] }
 0x876   : > { %p30_p9 = scmp.ge.s32.totalorder %s33_s26, 4   ;;  %s2387_s21 = smov %s1866_s22 }
 0x877   : > { %s2388_s22 = smov %s1870_s23  ;;  %s2389_s23 = smov %s2082_s14 }
 0x878   : > { %s2390_s24 = smov %s1878_s25  ;;  %32 = sbr.rel (!%p30_p9) target bundleno = 17 (0x11), region = 139 }
 0x87b   : > { %s2391_s25 = smov %s2386_s17 }
 0x87f   :  { %1372 = vsyncpa [#allocation3], 1 }
 0x880   :  { %1374 = vsyncpa [#allocation3 + $0x1], 1 }
 0x881   :  { %1375 = vsyncpa [#allocation6], 1 }
 0x882   :  { %1376 = vsyncpa [#allocation4], 1 }
 0x883   :  { %1378 = vsyncpa [#allocation4 + $0x1], 1 }

</bundles_post_ra>
